<compile_context>
chip_gen: v7x
topology: tpu7x:2x2x1
jax: 0.10.0
libtpu: 0.0.40
codegen_flags: <defaults>
</compile_context>

<pallas_src>
import jax
import jax.numpy as jnp
from jax.experimental import pallas as pl
from jax.experimental.pallas import tpu as pltpu  # noqa: F401  (TPU backend)


# ----------------------------- fused Pallas kernel -------------------------- #

def _fused_gcn_kernel(a_dd_ref, a_rd_ref, e_dis_ref, e_drug_ref,
                      d_i_ref, d_j_ref, dis_out_ref, drug_out_ref):
    """All 3 GCN layers + concat + final relu, fully VMEM/vreg resident.

    a_dd: (dis, drug)   a_rd: (drug, dis)
    e_dis: (dis, F)     e_drug: (drug, F)
    d_i: (dis, 1)       d_j: (drug, 1)          (per-row degree scalars)
    outputs: (dis, 4F), (drug, 4F)  -- 4F == 128 => lane-dense stores.
    """
    A = a_dd_ref[...]
    B = a_rd_ref[...]
    e_dis = e_dis_ref[...]
    e_drug = e_drug_ref[...]
    d_i = d_i_ref[...]          # (dis, 1) broadcast on VPU
    d_j = d_j_ref[...]          # (drug, 1)

    def layer(adj, x, self_e, deg):
        # relu(adj @ x + self_e * deg) ; MXU matmul, f32 epilogue on VPU.
        acc = jnp.dot(adj, x, preferred_element_type=jnp.float32)
        return jnp.maximum(acc + self_e * deg, 0.0)

    g1d = layer(A, e_drug, e_dis, d_i)
    g1r = layer(B, e_dis, e_drug, d_j)
    g2d = layer(A, g1r, g1d, d_i)
    g2r = layer(B, g1d, g1r, d_j)
    g3d = layer(A, g2r, g2d, d_i)
    g3r = layer(B, g2d, g2r, d_j)

    # concat to the lane-dense (N, 4F) slab, then the module's final relu.
    dis_out_ref[...] = jnp.maximum(
        jnp.concatenate([e_dis, g1d, g2d, g3d], axis=-1), 0.0
    ).astype(dis_out_ref.dtype)
    drug_out_ref[...] = jnp.maximum(
        jnp.concatenate([e_drug, g1r, g2r, g3r], axis=-1), 0.0
    ).astype(drug_out_ref.dtype)


def fused_gcn_embeddings(a_dd, a_rd, e_dis, e_drug, d_i, d_j):
    """Returns (gcn_dis_embedding (dis,4F), gcn_drug_embedding (drug,4F))."""
    dis_num, f = e_dis.shape
    drug_num, _ = e_drug.shape
    full = lambda arr: pl.BlockSpec(arr.shape, lambda: (0, 0))
    return pl.pallas_call(
        _fused_gcn_kernel,
        out_shape=(jax.ShapeDtypeStruct((dis_num, 4 * f), jnp.float32),
                   jax.ShapeDtypeStruct((drug_num, 4 * f), jnp.float32)),
        in_specs=[full(a_dd), full(a_rd), full(e_dis), full(e_drug),
                  full(d_i), full(d_j)],
        out_specs=(pl.BlockSpec((dis_num, 4 * f), lambda: (0, 0)),
                   pl.BlockSpec((drug_num, 4 * f), lambda: (0, 0))),
    )(a_dd, a_rd, e_dis, e_drug, d_i, d_j)


# --------------------------------- BPR forward ------------------------------ #

def bpr_forward(params, dis_idx, drug_i_idx, drug_j_idx):
    e_dis = params["embed_dis"].astype(jnp.float32)
    e_drug = params["embed_drug"].astype(jnp.float32)

    gcn_dis_embedding, gcn_drug_embedding = fused_gcn_embeddings(
        params["dis_drug_matrix"], params["drug_dis_matrix"],
        e_dis, e_drug, params["d_i_train"], params["d_j_train"])

    # F.embedding == row gather; B=8 rows of 128 lanes -> trivially cheap,
    # kept in plain JAX per the performance review (a Pallas (B,1)-output
    # kernel is pure launch overhead + masked partial stores).
    dis = gcn_dis_embedding[dis_idx]
    drug_i = gcn_drug_embedding[drug_i_idx]
    drug_j = gcn_drug_embedding[drug_j_idx]

    prediction_i = jnp.sum(dis * drug_i, axis=-1)
    prediction_j = jnp.sum(dis * drug_j, axis=-1)
    return prediction_i, prediction_j, dis, drug_i, drug_j


# ----------------------------------- driver --------------------------------- #

if __name__ == "__main__":
    dis_num, drug_num, factor_num, batch = 16, 24, 32, 8

    key = jax.random.PRNGKey(0)
    k1, k2, k3, k4, k5, k6, k7, k8, k9 = jax.random.split(key, 9)

    # deterministic "checkpoint-free" parameter init
    init_features_u = jax.random.normal(k1, (dis_num, factor_num), jnp.float32) * 0.1
    init_features_i = jax.random.normal(k2, (drug_num, factor_num), jnp.float32) * 0.1

    # dense stand-ins for the (normalized) sparse adjacency matrices
    dis_drug_matrix = jax.random.uniform(k3, (dis_num, drug_num), jnp.float32) / drug_num
    drug_dis_matrix = jax.random.uniform(k4, (drug_num, dis_num), jnp.float32) / dis_num

    # d_i_train / d_j_train: per-node degree scalars, kept as (N, 1) columns
    # (the torch .expand(-1, factor_num) is a row-constant broadcast, done
    #  inside the kernel instead of materialized in HBM).
    d_i_train = jax.random.uniform(k5, (dis_num, 1), jnp.float32) + 0.5
    d_j_train = jax.random.uniform(k6, (drug_num, 1), jnp.float32) + 0.5

    params = {
        "embed_dis": init_features_u,
        "embed_drug": init_features_i,
        "dis_drug_matrix": dis_drug_matrix,
        "drug_dis_matrix": drug_dis_matrix,
        "d_i_train": d_i_train,
        "d_j_train": d_j_train,
    }

    dis_idx    = jax.random.randint(k7, (batch,), 0, dis_num)
    drug_i_idx = jax.random.randint(k8, (batch,), 0, drug_num)
    drug_j_idx = jax.random.randint(k9, (batch,), 0, drug_num)

    pred_i, pred_j, dis_e, drug_i_e, drug_j_e = jax.jit(bpr_forward)(
        params, dis_idx, drug_i_idx, drug_j_idx)
    jax.block_until_ready((pred_i, pred_j, dis_e, drug_i_e, drug_j_e))

    # reference check in plain JAX
    def ref_forward(p, di, dii, dji):
        de, re = p["embed_dis"], p["embed_drug"]
        A, B = p["dis_drug_matrix"], p["drug_dis_matrix"]
        Diw, Djw = p["d_i_train"], p["d_j_train"]
        relu = lambda x: jnp.maximum(x, 0.0)
        g1d = relu(A @ re + de * Diw);  g1r = relu(B @ de + re * Djw)
        g2d = relu(A @ g1r + g1d * Diw); g2r = relu(B @ g1d + g1r * Djw)
        g3d = relu(A @ g2r + g2d * Diw); g3r = relu(B @ g2d + g2r * Djw)
        gd = relu(jnp.concatenate([de, g1d, g2d, g3d], -1))
        gr = relu(jnp.concatenate([re, g1r, g2r, g3r], -1))
        d, i, j = gd[di], gr[dii], gr[dji]
        return (d * i).sum(-1), (d * j).sum(-1), d, i, j

    ri, rj, rd, rii, rjj = ref_forward(params, dis_idx, drug_i_idx, drug_j_idx)
    assert jnp.allclose(pred_i, ri, atol=1e-4, rtol=1e-4)
    assert jnp.allclose(pred_j, rj, atol=1e-4, rtol=1e-4)
    assert jnp.allclose(dis_e, rd, atol=1e-5, rtol=1e-5)
    assert jnp.allclose(drug_i_e, rii, atol=1e-5, rtol=1e-5)
    assert jnp.allclose(drug_j_e, rjj, atol=1e-5, rtol=1e-5)

    print("KERNEL_OK")
</pallas_src>

<mosaic_0001>
module attributes {stable_mosaic.version = 11 : i64} {
  func.func @_fused_gcn_kernel(%arg0: memref<16x24xf32, #tpu.memory_space<vmem>>, %arg1: memref<24x16xf32, #tpu.memory_space<vmem>>, %arg2: memref<16x32xf32, #tpu.memory_space<vmem>>, %arg3: memref<24x32xf32, #tpu.memory_space<vmem>>, %arg4: memref<16x1xf32, #tpu.memory_space<vmem>>, %arg5: memref<24x1xf32, #tpu.memory_space<vmem>>, %arg6: memref<16x128xf32, #tpu.memory_space<vmem>>, %arg7: memref<24x128xf32, #tpu.memory_space<vmem>>) attributes {dimension_semantics = [], scalar_prefetch = 0 : i64, scratch_operands = 0 : i64, tpu.core_type = #tpu.core_type<tc>} {
    %c0 = arith.constant 0 : index
    %c0_0 = arith.constant 0 : index
    %0 = vector.load %arg0[%c0, %c0_0] : memref<16x24xf32, #tpu.memory_space<vmem>>, vector<16x24xf32>
    %c0_1 = arith.constant 0 : index
    %c0_2 = arith.constant 0 : index
    %1 = vector.load %arg1[%c0_1, %c0_2] : memref<24x16xf32, #tpu.memory_space<vmem>>, vector<24x16xf32>
    %c0_3 = arith.constant 0 : index
    %c0_4 = arith.constant 0 : index
    %2 = vector.load %arg2[%c0_3, %c0_4] : memref<16x32xf32, #tpu.memory_space<vmem>>, vector<16x32xf32>
    %c0_5 = arith.constant 0 : index
    %c0_6 = arith.constant 0 : index
    %3 = vector.load %arg3[%c0_5, %c0_6] : memref<24x32xf32, #tpu.memory_space<vmem>>, vector<24x32xf32>
    %c0_7 = arith.constant 0 : index
    %c0_8 = arith.constant 0 : index
    %4 = vector.load %arg4[%c0_7, %c0_8] : memref<16x1xf32, #tpu.memory_space<vmem>>, vector<16x1xf32>
    %c0_9 = arith.constant 0 : index
    %c0_10 = arith.constant 0 : index
    %5 = vector.load %arg5[%c0_9, %c0_10] : memref<24x1xf32, #tpu.memory_space<vmem>>, vector<24x1xf32>
    %cst = arith.constant dense<0.000000e+00> : vector<16x32xf32>
    %6 = tpu.matmul %0, %3, %cst {dimension_numbers = #tpu.dot_dimension_numbers<[1], [0], [0], [1], [0, 0, 1, 1], [], []>} : vector<16x24xf32>, vector<24x32xf32>, vector<16x32xf32> -> vector<16x32xf32>
    %7 = vector.broadcast %4 : vector<16x1xf32> to vector<16x32xf32>
    %8 = arith.mulf %2, %7 : vector<16x32xf32>
    %9 = arith.addf %6, %8 : vector<16x32xf32>
    %cst_11 = arith.constant 0.000000e+00 : f32
    %10 = vector.broadcast %cst_11 : f32 to vector<16x32xf32>
    %11 = arith.maximumf %9, %10 : vector<16x32xf32>
    %cst_12 = arith.constant dense<0.000000e+00> : vector<24x32xf32>
    %12 = tpu.matmul %1, %2, %cst_12 {dimension_numbers = #tpu.dot_dimension_numbers<[1], [0], [0], [1], [0, 0, 1, 1], [], []>} : vector<24x16xf32>, vector<16x32xf32>, vector<24x32xf32> -> vector<24x32xf32>
    %13 = vector.broadcast %5 : vector<24x1xf32> to vector<24x32xf32>
    %14 = arith.mulf %3, %13 : vector<24x32xf32>
    %15 = arith.addf %12, %14 : vector<24x32xf32>
    %cst_13 = arith.constant 0.000000e+00 : f32
    %16 = vector.broadcast %cst_13 : f32 to vector<24x32xf32>
    %17 = arith.maximumf %15, %16 : vector<24x32xf32>
    %cst_14 = arith.constant dense<0.000000e+00> : vector<16x32xf32>
    %18 = tpu.matmul %0, %17, %cst_14 {dimension_numbers = #tpu.dot_dimension_numbers<[1], [0], [0], [1], [0, 0, 1, 1], [], []>} : vector<16x24xf32>, vector<24x32xf32>, vector<16x32xf32> -> vector<16x32xf32>
    %19 = vector.broadcast %4 : vector<16x1xf32> to vector<16x32xf32>
    %20 = arith.mulf %11, %19 : vector<16x32xf32>
    %21 = arith.addf %18, %20 : vector<16x32xf32>
    %cst_15 = arith.constant 0.000000e+00 : f32
    %22 = vector.broadcast %cst_15 : f32 to vector<16x32xf32>
    %23 = arith.maximumf %21, %22 : vector<16x32xf32>
    %cst_16 = arith.constant dense<0.000000e+00> : vector<24x32xf32>
    %24 = tpu.matmul %1, %11, %cst_16 {dimension_numbers = #tpu.dot_dimension_numbers<[1], [0], [0], [1], [0, 0, 1, 1], [], []>} : vector<24x16xf32>, vector<16x32xf32>, vector<24x32xf32> -> vector<24x32xf32>
    %25 = vector.broadcast %5 : vector<24x1xf32> to vector<24x32xf32>
    %26 = arith.mulf %17, %25 : vector<24x32xf32>
    %27 = arith.addf %24, %26 : vector<24x32xf32>
    %cst_17 = arith.constant 0.000000e+00 : f32
    %28 = vector.broadcast %cst_17 : f32 to vector<24x32xf32>
    %29 = arith.maximumf %27, %28 : vector<24x32xf32>
    %cst_18 = arith.constant dense<0.000000e+00> : vector<16x32xf32>
    %30 = tpu.matmul %0, %29, %cst_18 {dimension_numbers = #tpu.dot_dimension_numbers<[1], [0], [0], [1], [0, 0, 1, 1], [], []>} : vector<16x24xf32>, vector<24x32xf32>, vector<16x32xf32> -> vector<16x32xf32>
    %31 = vector.broadcast %4 : vector<16x1xf32> to vector<16x32xf32>
    %32 = arith.mulf %23, %31 : vector<16x32xf32>
    %33 = arith.addf %30, %32 : vector<16x32xf32>
    %cst_19 = arith.constant 0.000000e+00 : f32
    %34 = vector.broadcast %cst_19 : f32 to vector<16x32xf32>
    %35 = arith.maximumf %33, %34 : vector<16x32xf32>
    %cst_20 = arith.constant dense<0.000000e+00> : vector<24x32xf32>
    %36 = tpu.matmul %1, %23, %cst_20 {dimension_numbers = #tpu.dot_dimension_numbers<[1], [0], [0], [1], [0, 0, 1, 1], [], []>} : vector<24x16xf32>, vector<16x32xf32>, vector<24x32xf32> -> vector<24x32xf32>
    %37 = vector.broadcast %5 : vector<24x1xf32> to vector<24x32xf32>
    %38 = arith.mulf %29, %37 : vector<24x32xf32>
    %39 = arith.addf %36, %38 : vector<24x32xf32>
    %cst_21 = arith.constant 0.000000e+00 : f32
    %40 = vector.broadcast %cst_21 : f32 to vector<24x32xf32>
    %41 = arith.maximumf %39, %40 : vector<24x32xf32>
    %42 = tpu.concatenate %2, %11, %23, %35 in 1 : vector<16x32xf32>, vector<16x32xf32>, vector<16x32xf32>, vector<16x32xf32> -> vector<16x128xf32>
    %cst_22 = arith.constant 0.000000e+00 : f32
    %43 = vector.broadcast %cst_22 : f32 to vector<16x128xf32>
    %44 = arith.maximumf %42, %43 : vector<16x128xf32>
    %c0_23 = arith.constant 0 : index
    %c0_24 = arith.constant 0 : index
    %45 = vector.load %arg6[%c0_23, %c0_24] : memref<16x128xf32, #tpu.memory_space<vmem>>, vector<16x128xf32>
    tpu.vector_store %arg6[%c0_23, %c0_24], %44 {strides = array<i32>} : memref<16x128xf32, #tpu.memory_space<vmem>>, vector<16x128xf32>,
    %46 = tpu.concatenate %3, %17, %29, %41 in 1 : vector<24x32xf32>, vector<24x32xf32>, vector<24x32xf32>, vector<24x32xf32> -> vector<24x128xf32>
    %cst_25 = arith.constant 0.000000e+00 : f32
    %47 = vector.broadcast %cst_25 : f32 to vector<24x128xf32>
    %48 = arith.maximumf %46, %47 : vector<24x128xf32>
    %c0_26 = arith.constant 0 : index
    %c0_27 = arith.constant 0 : index
    %49 = vector.load %arg7[%c0_26, %c0_27] : memref<24x128xf32, #tpu.memory_space<vmem>>, vector<24x128xf32>
    tpu.vector_store %arg7[%c0_26, %c0_27], %48 {strides = array<i32>} : memref<24x128xf32, #tpu.memory_space<vmem>>, vector<24x128xf32>,
    return
  }
}

</mosaic_0001>

<bundles_post_ra>
// kernel: bpr_forward.1
= control target key start
LH: loop header
LB: loop body
LE: loop exit
PB: predicated region body
PF: predicated region fallthrough
CT: control target
= control target key end

     0   :  { %v814_v0 = vmov 0.0|0.0   ;;  %vm815_vm0 = vmmov 0   ;;  %v816_v4 = vmov 0.0   ;;  %vm52_vm1 = vcmask 195584   ;;  %s820_s27 = smov 96   ;;  %s1043_s3 = inlined_call_operand.vmem [shape: f32[24,32], index: 3, kind: input, shape index: {}]   ;;  %s1044_s2 = inlined_call_operand.vmem [shape: f32[16,32], index: 2, kind: input, shape index: {}]   ;;  %s1045_s0 = inlined_call_operand.vmem [shape: f32[16,24], index: 0, kind: input, shape index: {}]   ;;  %s1046_s5 = inlined_call_operand.vmem [shape: f32[24,1], index: 5, kind: input, shape index: {}]   ;;  %s1047_s1 = inlined_call_operand.vmem [shape: f32[24,16], index: 1, kind: input, shape index: {}]   ;;  %s1048_s4 = inlined_call_operand.vmem [shape: f32[16,1], index: 4, kind: input, shape index: {}]   ;;  %s1049_s6 = inlined_call_operand.vmem [shape: f32[16,128], index: 6, kind: output, shape index: {0}]   ;;  %s1050_s7 = inlined_call_operand.vmem [shape: f32[24,128], index: 7, kind: output, shape index: {1}]  }
   0x1   :  { %788 = vmatprep.subr.bf16.mxu1 %v814_v0  ;;  %v865_v1 = vld [vmem:[%s1043_s3] sm:$0xff]  ;;  %v870_v2 = vld [vmem:[%s1043_s3 + $0x8] sm:$0xff]  ;;  %731 = vmatprep.mubr.msk.f32.mxu1 %vm815_vm0, %v816_v4  ;;  %v817_v7 = vmov 0   ;;  %v891_v9 = vld [vmem:[%s1043_s3 + $0x10] sm:$0xff]  ;;  %vm154_vm2 = vcmask 130048   ;;  %vm604_vm3 = vcmask 523264  }
   0x2   :  { %v875_v3 = vld [vmem:[%s1044_s2] sm:$0xff]  ;;  %v784_v5 = vpack.c.bf16 %v870_v2, %v865_v1  ;;  %v884_v6 = vld [vmem:[%s1044_s2 + $0x8] sm:$0xff]  ;;  %812 = vset.pattern.permute.xlu0 %v817_v7  ;;  %813 = vset.pattern.permute.xlu1 %v817_v7  ;;  %v39_v13 = vld [vmem:[%s1046_s5 + $0x10] sm:$0xff]  ;;  %vm601_vm4 = vcmask 261120   ;;  %vm607_vm5 = vcmask 785408  }
   0x3   :  { %v789_v8 = vpack.c.bf16 %v884_v6, %v875_v3  ;;  %v25_v10 = vld [vmem:[%s1045_s0] sm:$0xff]  ;;  %v912_v14 = vld [vmem:[%s1045_s0 + $0x8] sm:$0xff]  ;;  %148 = vperm.xlu1 %813, %v39_v13   ;;  %v943_v19 = vld [vmem:[%s1047_s1 + $0x10] sm:$0xff] }
   0x4   :  { %785 = vmatprep.subr.bf16.mxu0 %v784_v5  ;;  %724 = vmatprep.mubr.msk.f32.mxu0 %vm52_vm1, %v25_v10  ;;  %v37_v11 = vld [vmem:[%s1046_s5] sm:$0xff]  ;;  %v38_v15 = vld [vmem:[%s1046_s5 + $0x8] sm:$0xff] }
   0x5   :  { %790 = vmatpush3.bf16.msra.mxu1 %v789_v8  ;;  %787 = vmatpush3.bf16.msra.mxu0 %v784_v5  ;;  %v903_v12 = vld [vmem:[%s1047_s1] sm:$0xff]  ;;  %v928_v17 = vld [vmem:[%s1047_s1 + $0x8] sm:$0xff]  ;;  %s818_s1 = smov 32  }
   0x6   :  { %722 = vmatprep.subr.mxu0 %v891_v9  ;;  %138 = vperm.xlu0 %812, %v37_v11   ;;  %v35_v16 = vld [vmem:[%s1048_s4] sm:$0xff]  ;;  %v36_v18 = vld [vmem:[%s1048_s4 + $0x8] sm:$0xff]  ;;  %s819_s4 = smov 64  }
   0x7   :  { %42 = vperm.xlu1 %813, %v35_v16  }
   0x8   :  { %732 = vmatmul.mubr.msk.f32.vlgmr.msra.gmra.mrb[0].mxu1 %vm154_vm2, %v903_v12 }
   0x9   :  { %723 = vmatpush3.msra.mxu0 %v891_v9  ;;  %734 = vmatprep.mubr.msk.f32.mxu1 %vm815_vm0, %v816_v4 }
   0xa   :  { %725 = vmatmul.mubr.msk.f32.vlgmr.msra.gmra.mrb[0].mxu0 %vm52_vm1, %v912_v14  ;;  %143 = vperm.xlu0 %812, %v38_v15  }
   0xb   :  { %746 = vmatprep.mubr.msk.f32.mxu0 %vm52_vm1, %v25_v10 }
   0xc   :  { %735 = vmatmul.mubr.msk.f32.gmra.mrb[2].mxu1 %vm154_vm2, %v928_v17 }
   0xd   :  { %737 = vmatprep.mubr.msk.f32.mxu1 %vm815_vm0, %v816_v4 }
   0xe   :  { %47 = vperm.xlu0 %812, %v36_v18  }
  0x10   :  { %738 = vmatmul.mubr.msk.f32.gmra.mrb[4].mxu1 %vm154_vm2, %v943_v19 }
  0x11   :  { %768 = vmatprep.mubr.msk.f32.mxu1 %vm52_vm1, %v25_v10 }
  0x82   :  { %v950_v21 = vpop.permute.xlu1 %148 }
  0x83   :  { %v153_v41 = vmul.f32 %v950_v21, %v891_v9 }
  0x85   :  { %v948_v20 = vpop.permute.xlu0 %138 }
  0x86   :  { %v151_v23 = vmul.f32 %v948_v20, %v865_v1  ;;  %v956_v24 = vpop.permute.xlu1 %42 }
  0x87   :  { %v50_v27 = vmul.f32 %v956_v24, %v875_v3 }
  0x89   :  { %v952_v22 = vpop.permute.xlu0 %143 }
  0x8a   :  { %v152_v35 = vmul.f32 %v952_v22, %v870_v2 }
  0x8d   :  { %v958_v25 = vpop.permute.xlu0 %47 }
  0x8e   :  { %v51_v30 = vmul.f32 %v958_v25, %v884_v6 }
  0xdb   :  { %v230_v26 = vpop.f32.mrb[0].mxu1 }
  0xdc   :  { %v231_v28 = vadd.f32 %v230_v26, %v151_v23  ;;  %v733_v29 = vpop.f32.mrb[1].mxu1 }
  0xdd   :  { %v726_v31 = vpop.f32.mrb[0].mxu0 }
  0xde   :  { %v244_v32 = vmax.f32 %v231_v28, 0.0  ;;  %v131_v33 = vadd.f32 %v726_v31, %v51_v30  ;;  %v125_v34 = vpop.f32.mrb[1].mxu0 }
  0xdf   :  { %v126_v36 = vadd.f32 %v125_v34, %v50_v27  ;;  %v235_v37 = vpop.f32.mrb[2].mxu1 }
  0xe0   :  { %v135_v38 = vmax.f32 %v131_v33, 0.0  ;;  %v236_v39 = vadd.f32 %v235_v37, %v152_v35  ;;  %617 = vrot.lane.b32.xlu1 %v244_v32, %s818_s1  ;;  %v736_v40 = vpop.f32.mrb[3].mxu1  ;;  %v326_v57 = vmul.f32 %v244_v32, %v948_v20 }
  0xe1   :  { %v134_v42 = vmax.f32 %v126_v36, 0.0 }
  0xe2   :  { %v245_v43 = vmax.f32 %v236_v39, 0.0  ;;  %581 = vrot.lane.b32.xlu0 %v135_v38, %s818_s1  ;;  %v248_v50 = vmul.f32 %v135_v38, %v958_v25 }
  0xe3   :  { %v796_v44 = vpack.c.bf16 %v135_v38, %v134_v42  ;;  %v240_v45 = vpop.f32.mrb[4].mxu1  ;;  %v247_v52 = vmul.f32 %v134_v42, %v956_v24 }
  0xe4   :  { %v241_v46 = vadd.f32 %v240_v45, %v153_v41  ;;  %579 = vrot.lane.b32.xlu1 %v134_v42, %s818_s1  ;;  %v739_v47 = vpop.f32.mrb[5].mxu1  ;;  %v791_v48 = vpack.c.bf16 %v245_v43, %v244_v32  ;;  %v327_v5 = vmul.f32 %v245_v43, %v952_v22 }
  0xe6   :  { %v246_v49 = vmax.f32 %v241_v46, 0.0  ;;  %792 = vmatprep.subr.bf16.mxu0 %v791_v48  ;;  %619 = vrot.lane.b32.xlu0 %v245_v43, %s818_s1 }
  0xe7   :  { %794 = vmatpush3.bf16.msra.mxu0 %v791_v48 }
  0xe8   :  { %744 = vmatprep.subr.mxu0 %v246_v49  ;;  %621 = vrot.lane.b32.xlu1 %v246_v49, %s818_s1  ;;  %v328_v13 = vmul.f32 %v246_v49, %v950_v21 }
  0xeb   :  { %745 = vmatpush3.msra.mxu0 %v246_v49 }
  0xec   :  { %747 = vmatmul.mubr.msk.f32.vlgmr.msra.gmra.mrb[2].mxu0 %vm52_vm1, %v912_v14  ;;  %795 = vmatprep.subr.bf16.mxu0 %v814_v0 }
  0xed   :  { %797 = vmatpush3.bf16.msra.mxu0 %v796_v44  ;;  %753 = vmatprep.mubr.msk.f32.mxu0 %vm815_vm0, %v816_v4 }
  0xf0   :  { %754 = vmatmul.mubr.msk.f32.vlgmr.msra.gmra.mrb[4].mxu0 %vm154_vm2, %v903_v12 }
  0xf1   :  { %756 = vmatprep.mubr.msk.f32.mxu0 %vm815_vm0, %v816_v4 }
  0xf4   :  { %757 = vmatmul.mubr.msk.f32.gmra.mrb[6].mxu0 %vm154_vm2, %v928_v17 }
  0xf5   :  { %759 = vmatprep.mubr.msk.f32.mxu0 %vm815_vm0, %v816_v4 }
  0xf8   :  { %760 = vmatmul.mubr.msk.f32.gmra.mrb[8].mxu0 %vm154_vm2, %v943_v19 }
 0x152   :  { %v618_v42 = vpop.permute.xlu1 %617 }
 0x154   :  { %v582_v41 = vpop.permute.xlu0 %581 }
 0x156   :  { %v580_v44 = vpop.permute.xlu1 %579 }
 0x158   :  { %v620_v43 = vpop.permute.xlu0 %619 }
 0x15a   :  { %v622_v46 = vpop.permute.xlu1 %621 }
 0x1bf   :  { %v748_v51 = vpop.f32.mrb[2].mxu0 }
 0x1c0   :  { %v321_v53 = vadd.f32 %v748_v51, %v248_v50  ;;  %v315_v54 = vpop.f32.mrb[3].mxu0  ;;  %v602_v50 = vsel %vm601_vm4, %v875_v3, %v580_v44 }
 0x1c1   :  { %v316_v55 = vadd.f32 %v315_v54, %v247_v52 }
 0x1c2   :  { %v325_v56 = vmax.f32 %v321_v53, 0.0 }
 0x1c3   :  { %v324_v58 = vmax.f32 %v316_v55, 0.0  ;;  %v395_v59 = vpop.f32.mrb[4].mxu0 }
 0x1c4   :  { %v396_v60 = vadd.f32 %v395_v59, %v326_v57  ;;  %589 = vrot.lane.b32.xlu1 %v325_v56, %s819_s4  ;;  %v755_v61 = vpop.f32.mrb[5].mxu0  ;;  %v650_v59 = vsel %vm601_vm4, %v865_v1, %v618_v42 }
 0x1c5   :  { %v803_v62 = vpack.c.bf16 %v325_v56, %v324_v58  ;;  %587 = vrot.lane.b32.xlu0 %v324_v58, %s819_s4  ;;  %v412_v27 = vmul.f32 %v324_v58, %v956_v24  ;;  %v651_v61 = vsel %vm601_vm4, %v870_v2, %v620_v43 }
 0x1c6   :  { %v409_v63 = vmax.f32 %v396_v60, 0.0 }
 0x1c7   :  { %v400_v7 = vpop.f32.mrb[6].mxu0 }
 0x1c8   :  { %v401_v8 = vadd.f32 %v400_v7, %v327_v5  ;;  %v758_v10 = vpop.f32.mrb[7].mxu0  ;;  %v491_v31 = vmul.f32 %v409_v63, %v948_v20 }
 0x1c9   :  { %629 = vrot.lane.b32.xlu0 %v409_v63, %s819_s4 }
 0x1ca   :  { %v410_v11 = vmax.f32 %v401_v8, 0.0  ;;  %v652_v8 = vsel %vm601_vm4, %v891_v9, %v622_v46 }
 0x1cb   :  { %v405_v15 = vpop.f32.mrb[8].mxu0 }
 0x1cc   :  { %v406_v16 = vadd.f32 %v405_v15, %v328_v13  ;;  %631 = vrot.lane.b32.xlu1 %v410_v11, %s819_s4  ;;  %v798_v18 = vpack.c.bf16 %v410_v11, %v409_v63  ;;  %v761_v23 = vpop.f32.mrb[9].mxu0 }
 0x1ce   :  { %v411_v26 = vmax.f32 %v406_v16, 0.0  ;;  %799 = vmatprep.subr.bf16.mxu1 %v798_v18 }
 0x1cf   :  { %801 = vmatpush3.bf16.msra.mxu1 %v798_v18 }
 0x1d0   :  { %766 = vmatprep.subr.mxu1 %v411_v26  ;;  %633 = vrot.lane.b32.xlu0 %v411_v26, %s819_s4  ;;  %v493_v37 = vmul.f32 %v411_v26, %v950_v21  ;;  %v603_v21 = vsel %vm601_vm4, %v884_v6, %v582_v41 }
 0x1d3   :  { %767 = vmatpush3.msra.mxu1 %v411_v26 }
 0x1d4   :  { %769 = vmatmul.mubr.msk.f32.vlgmr.msra.gmra.mrb[6].mxu1 %vm52_vm1, %v912_v14  ;;  %802 = vmatprep.subr.bf16.mxu1 %v814_v0  ;;  %v413_v0 = vmul.f32 %v325_v56, %v958_v25 }
 0x1d5   :  { %804 = vmatpush3.bf16.msra.mxu1 %v803_v62  ;;  %775 = vmatprep.mubr.msk.f32.mxu1 %vm815_vm0, %v816_v4 }
 0x1d8   :  { %776 = vmatmul.mubr.msk.f32.vlgmr.msra.gmra.mrb[8].mxu1 %vm154_vm2, %v903_v12 }
 0x1d9   :  { %778 = vmatprep.mubr.msk.f32.mxu1 %vm815_vm0, %v816_v4 }
 0x1dc   :  { %779 = vmatmul.mubr.msk.f32.gmra.mrb[10].mxu1 %vm154_vm2, %v928_v17 }
 0x1dd   :  { %781 = vmatprep.mubr.msk.f32.mxu1 %vm815_vm0, %v816_v4 }
 0x1e0   :  { %782 = vmatmul.mubr.msk.f32.gmra.mrb[12].mxu1 %vm154_vm2, %v943_v19  ;;  %v492_v19 = vmul.f32 %v410_v11, %v952_v22 }
 0x236   :  { %v590_v47 = vpop.permute.xlu1 %589 }
 0x237   :  { %v588_v45 = vpop.permute.xlu0 %587  ;;  %v606_v51 = vsel %vm604_vm3, %v603_v21, %v590_v47 }
 0x238   :  { %v605_v53 = vsel %vm604_vm3, %v602_v50, %v588_v45 }
 0x23b   :  { %v630_v22 = vpop.permute.xlu0 %629 }
 0x23c   :  { %v653_v3 = vsel %vm604_vm3, %v650_v59, %v630_v22 }
 0x23e   :  { %v632_v49 = vpop.permute.xlu1 %631 }
 0x23f   :  { %v654_v63 = vsel %vm604_vm3, %v651_v61, %v632_v49 }
 0x242   :  { %v634_v48 = vpop.permute.xlu0 %633 }
 0x243   :  { %v655_v10 = vsel %vm604_vm3, %v652_v8, %v634_v48 }
 0x2a7   :  { %v770_v14 = vpop.f32.mrb[6].mxu1 }
 0x2a8   :  { %v486_v28 = vadd.f32 %v770_v14, %v413_v0  ;;  %v480_v29 = vpop.f32.mrb[7].mxu1 }
 0x2a9   :  { %v481_v12 = vadd.f32 %v480_v29, %v412_v27 }
 0x2aa   :  { %v490_v30 = vmax.f32 %v486_v28, 0.0 }
 0x2ab   :  { %v489_v32 = vmax.f32 %v481_v12, 0.0  ;;  %v560_v33 = vpop.f32.mrb[8].mxu1 }
 0x2ac   :  { %v561_v17 = vadd.f32 %v560_v33, %v491_v31  ;;  %597 = vrot.lane.b32.xlu0 %v490_v30, %s820_s27  ;;  %v777_v4 = vpop.f32.mrb[9].mxu1 }
 0x2ad   :  { %595 = vrot.lane.b32.xlu1 %v489_v32, %s820_s27 }
 0x2ae   :  { %v574_v34 = vmax.f32 %v561_v17, 0.0 }
 0x2af   :  { %v565_v25 = vpop.f32.mrb[10].mxu1 }
 0x2b0   :  { %v566_v35 = vadd.f32 %v565_v25, %v492_v19  ;;  %v780_v36 = vpop.f32.mrb[11].mxu1 }
 0x2b1   :  { %641 = vrot.lane.b32.xlu1 %v574_v34, %s820_s27 }
 0x2b2   :  { %v575_v24 = vmax.f32 %v566_v35, 0.0 }
 0x2b3   :  { %v570_v38 = vpop.f32.mrb[12].mxu1 }
 0x2b4   :  { %v571_v39 = vadd.f32 %v570_v38, %v493_v37  ;;  %643 = vrot.lane.b32.xlu0 %v575_v24, %s820_s27  ;;  %v783_v20 = vpop.f32.mrb[13].mxu1 }
 0x2b6   :  { %v576_v40 = vmax.f32 %v571_v39, 0.0 }
 0x2b8   :  { %645 = vrot.lane.b32.xlu1 %v576_v40, %s820_s27 }
 0x31e   :  { %v598_v52 = vpop.permute.xlu0 %597 }
 0x31f   :  { %v609_v54 = vsel %vm607_vm5, %v606_v51, %v598_v52  ;;  %v596_v55 = vpop.permute.xlu1 %595 }
 0x320   :  { %v611_v56 = vmax.f32 %v609_v54, 0.0  ;;  %v608_v57 = vsel %vm607_vm5, %v605_v53, %v596_v55 }
 0x321   :  { %v610_v58 = vmax.f32 %v608_v57, 0.0 }
 0x322   :  { %613 = vst [vmem:[%s1049_s6 + $0x8] sm:$0xff] %v611_v56 }
 0x323   :  { %612 = vst [vmem:[%s1049_s6] sm:$0xff] %v610_v58  ;;  %v642_v6 = vpop.permute.xlu1 %641 }
 0x324   :  { %v656_v60 = vsel %vm607_vm5, %v653_v3, %v642_v6 }
 0x325   :  { %v659_v62 = vmax.f32 %v656_v60, 0.0 }
 0x326   :  { %v644_v1 = vpop.permute.xlu0 %643 }
 0x327   :  { %662 = vst [vmem:[%s1050_s7] sm:$0xff] %v659_v62  ;;  %v657_v5 = vsel %vm607_vm5, %v654_v63, %v644_v1 }
 0x328   :  { %v660_v7 = vmax.f32 %v657_v5, 0.0 }
 0x32a   :  { %663 = vst [vmem:[%s1050_s7 + $0x8] sm:$0xff] %v660_v7  ;;  %v646_v2 = vpop.permute.xlu1 %645 }
 0x32b   :  { %v658_v11 = vsel %vm607_vm5, %v655_v10, %v646_v2 }
 0x32c   :  { %v661_v13 = vmax.f32 %v658_v11, 0.0 }
 0x32e   :  { %664 = vst [vmem:[%s1050_s7 + $0x10] sm:$0xff] %v661_v13 }

</bundles_post_ra>
